<compile_context>
chip_gen: v7x
topology: tpu7x:2x2x1
jax: 0.10.0
libtpu: 0.0.40
codegen_flags: <defaults>
</compile_context>

<pallas_src>
import math

import jax
import jax.numpy as jnp
from jax.experimental import pallas as pl
from jax.experimental.pallas import tpu as pltpu

_SUBLANES = 8
_LANES = 128


def _gaussian_kernel(e_ref, mean_ref, c2_ref, coef_ref, d_ref, o_ref):
    """One grid step: (br, L) distances -> (br, L*K) interleaved gaussians.

    e_ref    : (L, L*K) bf16 one-hot lane-expansion matrix (resident).
    mean_ref : (1, L*K) f32, mean[q % K].
    c2_ref   : (1, L*K) f32, -0.5 / std[q % K]**2.
    coef_ref : (1, L*K) f32, 1 / (std[q % K] * sqrt(2*pi)).
    d_ref    : (br, L)   distances, native dtype.
    o_ref    : (br, L*K) output; row-major flattening == final (..., K) layout.
    """
    d = d_ref[...].astype(jnp.float32)

    # Exact lane expansion rep[r, q] = d[r, q // K] on the (otherwise idle) MXU:
    # split d into three bf16 pieces so every bf16 x one-hot product is exact
    # and their f32 sum reconstructs d to ~1 ulp, independent of matmul
    # precision modes.  At L = 32 this MXU work is hidden under the stores.
    d_hi = d.astype(jnp.bfloat16)
    r1 = d - d_hi.astype(jnp.float32)
    d_mid = r1.astype(jnp.bfloat16)
    d_lo = (r1 - d_mid.astype(jnp.float32)).astype(jnp.bfloat16)

    e = e_ref[...]
    rep = jnp.dot(d_hi, e, preferred_element_type=jnp.float32)
    rep = rep + jnp.dot(d_mid, e, preferred_element_type=jnp.float32)
    rep = rep + jnp.dot(d_lo, e, preferred_element_type=jnp.float32)

    # Gaussian on VPU/EUP with folded constants: coef * exp(c2 * (d - mean)^2).
    z = rep - mean_ref[...]
    o_ref[...] = (coef_ref[...] * jnp.exp(c2_ref[...] * (z * z))).astype(o_ref.dtype)


def gaussian_layer(distance: jax.Array,
                   means: jax.Array,
                   stds: jax.Array,
                   *,
                   block_rows: int = 8192,
                   out_dtype=jnp.float32) -> jax.Array:
    """Pallas implementation of GaussianLayer.forward.

    distance: arbitrary-shaped float array.
    means, stds: shape (1, K) embedding weights.
    Returns: distance.shape + (K,) in `out_dtype` (default float32, matching torch).
    """
    orig_shape = distance.shape
    k = means.shape[-1]
    m_total = math.prod(orig_shape)

    if m_total == 0:                       # grid of size 0 is not valid
        return jnp.zeros((*orig_shape, k), dtype=out_dtype)

    # ---- O(K) parameter preprocessing (hoisted out of the kernel) -----------
    mean_v = means.astype(jnp.float32).reshape(k)
    std_v = jnp.abs(stds.astype(jnp.float32).reshape(k)) + 0.01
    inv_std = 1.0 / std_v
    coef_v = inv_std * (1.0 / math.sqrt(2.0 * math.pi))   # 1 / (std * sqrt(2*pi))
    c2_v = -0.5 * inv_std * inv_std                        # -0.5 / std^2

    # Input-row width L: the L*K-lane output rows must be a multiple of 128 for
    # unmasked lane-dense stores; L = 32 keeps the one-hot matmul tiny.
    ell = 32 if (32 * k) % _LANES == 0 else _LANES
    out_w = ell * k

    # Lane vectors vec[q] = param[q % K], shape (1, L*K).
    mean_q = jnp.tile(mean_v, ell).reshape(1, out_w)
    c2_q = jnp.tile(c2_v, ell).reshape(1, out_w)
    coef_q = jnp.tile(coef_v, ell).reshape(1, out_w)

    # One-hot expansion matrix E[c, q] = 1 iff q // K == c (exact in bf16).
    expand = (jnp.arange(ell, dtype=jnp.int32)[:, None]
              == (jnp.arange(out_w, dtype=jnp.int32) // k)[None, :]
              ).astype(jnp.bfloat16)

    # ---- input: keep native dtype (cast in-kernel), pad only to multiple of L
    if distance.dtype not in (jnp.float32, jnp.bfloat16, jnp.float16):
        distance = distance.astype(jnp.float32)
    d_flat = distance.reshape(m_total)
    m_padded = pl.cdiv(m_total, ell) * ell
    if m_padded != m_total:
        d_flat = jnp.pad(d_flat, (0, m_padded - m_total))
    rows = m_padded // ell
    d2 = d_flat.reshape(rows, ell)

    # ---- row-block size: largest comfortable tile; ragged last block is fine.
    if block_rows >= rows:
        br = rows
    else:
        br = max(_SUBLANES, (block_rows // _SUBLANES) * _SUBLANES)
    grid = (pl.cdiv(rows, br),)

    out2d = pl.pallas_call(
        _gaussian_kernel,
        out_shape=jax.ShapeDtypeStruct((rows, out_w), out_dtype),
        grid_spec=pltpu.PrefetchScalarGridSpec(
            num_scalar_prefetch=0,
            grid=grid,
            in_specs=[
                pl.BlockSpec((ell, out_w), lambda i: (0, 0)),   # expand (resident)
                pl.BlockSpec((1, out_w), lambda i: (0, 0)),     # mean[q % K]
                pl.BlockSpec((1, out_w), lambda i: (0, 0)),     # -0.5/std^2
                pl.BlockSpec((1, out_w), lambda i: (0, 0)),     # 1/(std*sqrt(2pi))
                pl.BlockSpec((br, ell), lambda i: (i, 0)),      # distances
            ],
            out_specs=pl.BlockSpec((br, out_w), lambda i: (i, 0)),
        ),
        compiler_params=pltpu.CompilerParams(
            dimension_semantics=("parallel",),
            vmem_limit_bytes=32 * 1024 * 1024,
        ),
    )(expand, mean_q, c2_q, coef_q, d2)

    # Row-major flattening of (rows, L*K) is already the (..., K) layout.
    out_flat = out2d.reshape(rows * out_w)
    if m_padded != m_total:
        # TODO(synk): this tail slice is one extra pass over the output; it is
        # only hit when numel(distance) is not a multiple of 32.
        out_flat = out_flat[: m_total * k]
    return out_flat.reshape(*orig_shape, k)


def gaussian_layer_ref(distance, means, stds):
    """Pure-JAX reference matching the PyTorch module."""
    d = distance.astype(jnp.float32)[..., None]
    mean = means.astype(jnp.float32).reshape(-1)
    std = jnp.abs(stds.astype(jnp.float32).reshape(-1)) + 0.01
    return jnp.exp(-0.5 * ((d - mean) / std) ** 2) / (math.sqrt(2.0 * math.pi) * std)


if __name__ == "__main__":
    num_kernels = 8
    in_dim = 3

    key = jax.random.PRNGKey(0)
    k_means, k_stds, k_d1, k_d2, k_d3 = jax.random.split(key, 5)

    # nn.init.uniform_(weight, 0, in_dim) for both embeddings, shape (1, K).
    means = jax.random.uniform(k_means, (1, num_kernels),
                               minval=0.0, maxval=float(in_dim), dtype=jnp.float32)
    stds = jax.random.uniform(k_stds, (1, num_kernels),
                              minval=0.0, maxval=float(in_dim), dtype=jnp.float32)

    # 1) Pairwise-distance-like input: batch=2, 16x16 node pairs
    #    (numel % 32 == 0 -> zero-copy, no pad, no tail slice).
    d1 = jax.random.uniform(k_d1, (2, 16, 16), minval=0.0, maxval=5.0,
                            dtype=jnp.float32)
    o1 = jax.block_until_ready(gaussian_layer(d1, means, stds))
    r1 = gaussian_layer_ref(d1, means, stds)
    assert o1.shape == (2, 16, 16, num_kernels), o1.shape
    assert jnp.allclose(o1, r1, atol=1e-5, rtol=1e-5), (
        float(jnp.max(jnp.abs(o1 - r1))))

    # 2) Ragged size (numel % 32 != 0) -> exercises the pad + tail-slice path.
    d2 = jax.random.uniform(k_d2, (3, 7, 11), minval=0.0, maxval=5.0,
                            dtype=jnp.float32)
    o2 = jax.block_until_ready(gaussian_layer(d2, means, stds))
    r2 = gaussian_layer_ref(d2, means, stds)
    assert o2.shape == (3, 7, 11, num_kernels), o2.shape
    assert jnp.allclose(o2, r2, atol=1e-5, rtol=1e-5), (
        float(jnp.max(jnp.abs(o2 - r2))))

    # 3) Small block_rows -> multi-step grid with a ragged final block, bf16 input.
    d3 = jax.random.uniform(k_d3, (5, 9, 13), minval=0.0, maxval=5.0,
                            dtype=jnp.float32).astype(jnp.bfloat16)
    o3 = jax.block_until_ready(gaussian_layer(d3, means, stds, block_rows=8))
    r3 = gaussian_layer_ref(d3, means, stds)
    assert o3.shape == (5, 9, 13, num_kernels), o3.shape
    assert jnp.allclose(o3, r3, atol=1e-4, rtol=1e-4), (
        float(jnp.max(jnp.abs(o3 - r3))))

    print("KERNEL_OK")
</pallas_src>

<mosaic_0001>
module attributes {stable_mosaic.version = 11 : i64} {
  func.func @_gaussian_kernel(%arg0: i32, %arg1: memref<32x256xbf16, #tpu.memory_space<vmem>>, %arg2: memref<1x256xf32, #tpu.memory_space<vmem>>, %arg3: memref<1x256xf32, #tpu.memory_space<vmem>>, %arg4: memref<1x256xf32, #tpu.memory_space<vmem>>, %arg5: memref<16x32xf32, #tpu.memory_space<vmem>>, %arg6: memref<16x256xf32, #tpu.memory_space<vmem>>) attributes {dimension_semantics = [#tpu.dimension_semantics<parallel>], iteration_bounds = array<i64: 1>, scalar_prefetch = 0 : i64, scratch_operands = 0 : i64, tpu.core_type = #tpu.core_type<tc>, window_params = [{pipeline_mode = #tpu.pipeline_mode<synchronous>, transform_indices = @transform_0, window_bounds = array<i64: 32, 256>}, {pipeline_mode = #tpu.pipeline_mode<synchronous>, transform_indices = @transform_1, window_bounds = array<i64: 1, 256>}, {pipeline_mode = #tpu.pipeline_mode<synchronous>, transform_indices = @transform_2, window_bounds = array<i64: 1, 256>}, {pipeline_mode = #tpu.pipeline_mode<synchronous>, transform_indices = @transform_3, window_bounds = array<i64: 1, 256>}, {transform_indices = @transform_4, window_bounds = array<i64: 16, 32>}, {transform_indices = @transform_5, window_bounds = array<i64: 16, 256>}]} {
    %c0 = arith.constant 0 : index
    %c0_0 = arith.constant 0 : index
    %0 = vector.load %arg5[%c0, %c0_0] : memref<16x32xf32, #tpu.memory_space<vmem>>, vector<16x32xf32>
    %1 = arith.truncf %0 : vector<16x32xf32> to vector<16x32xbf16>
    %2 = arith.extf %1 : vector<16x32xbf16> to vector<16x32xf32>
    %3 = arith.subf %0, %2 : vector<16x32xf32>
    %4 = arith.truncf %3 : vector<16x32xf32> to vector<16x32xbf16>
    %5 = arith.extf %4 : vector<16x32xbf16> to vector<16x32xf32>
    %6 = arith.subf %3, %5 : vector<16x32xf32>
    %7 = arith.truncf %6 : vector<16x32xf32> to vector<16x32xbf16>
    %c0_1 = arith.constant 0 : index
    %c0_2 = arith.constant 0 : index
    %8 = vector.load %arg1[%c0_1, %c0_2] : memref<32x256xbf16, #tpu.memory_space<vmem>>, vector<32x256xbf16>
    %cst = arith.constant dense<0.000000e+00> : vector<16x256xf32>
    %9 = tpu.matmul %1, %8, %cst {dimension_numbers = #tpu.dot_dimension_numbers<[1], [0], [0], [1], [0, 0, 1, 1], [], []>} : vector<16x32xbf16>, vector<32x256xbf16>, vector<16x256xf32> -> vector<16x256xf32>
    %cst_3 = arith.constant dense<0.000000e+00> : vector<16x256xf32>
    %10 = tpu.matmul %4, %8, %cst_3 {dimension_numbers = #tpu.dot_dimension_numbers<[1], [0], [0], [1], [0, 0, 1, 1], [], []>} : vector<16x32xbf16>, vector<32x256xbf16>, vector<16x256xf32> -> vector<16x256xf32>
    %11 = arith.addf %9, %10 : vector<16x256xf32>
    %cst_4 = arith.constant dense<0.000000e+00> : vector<16x256xf32>
    %12 = tpu.matmul %7, %8, %cst_4 {dimension_numbers = #tpu.dot_dimension_numbers<[1], [0], [0], [1], [0, 0, 1, 1], [], []>} : vector<16x32xbf16>, vector<32x256xbf16>, vector<16x256xf32> -> vector<16x256xf32>
    %13 = arith.addf %11, %12 : vector<16x256xf32>
    %c0_5 = arith.constant 0 : index
    %c0_6 = arith.constant 0 : index
    %14 = vector.load %arg2[%c0_5, %c0_6] : memref<1x256xf32, #tpu.memory_space<vmem>>, vector<1x256xf32>
    %15 = vector.broadcast %14 : vector<1x256xf32> to vector<16x256xf32>
    %16 = arith.subf %13, %15 : vector<16x256xf32>
    %c0_7 = arith.constant 0 : index
    %c0_8 = arith.constant 0 : index
    %17 = vector.load %arg4[%c0_7, %c0_8] : memref<1x256xf32, #tpu.memory_space<vmem>>, vector<1x256xf32>
    %c0_9 = arith.constant 0 : index
    %c0_10 = arith.constant 0 : index
    %18 = vector.load %arg3[%c0_9, %c0_10] : memref<1x256xf32, #tpu.memory_space<vmem>>, vector<1x256xf32>
    %19 = arith.mulf %16, %16 : vector<16x256xf32>
    %20 = vector.broadcast %18 : vector<1x256xf32> to vector<16x256xf32>
    %21 = arith.mulf %20, %19 : vector<16x256xf32>
    %22 = math.exp %21 : vector<16x256xf32>
    %23 = vector.broadcast %17 : vector<1x256xf32> to vector<16x256xf32>
    %24 = arith.mulf %23, %22 : vector<16x256xf32>
    %c0_11 = arith.constant 0 : index
    %c0_12 = arith.constant 0 : index
    %25 = vector.load %arg6[%c0_11, %c0_12] : memref<16x256xf32, #tpu.memory_space<vmem>>, vector<16x256xf32>
    tpu.vector_store %arg6[%c0_11, %c0_12], %24 {strides = array<i32>} : memref<16x256xf32, #tpu.memory_space<vmem>>, vector<16x256xf32>,
    return
  }
  func.func @transform_0(%arg0: i32) -> (i32, i32) {
    %c0_i32 = arith.constant 0 : i32
    %c0_i32_0 = arith.constant 0 : i32
    %c0_i32_1 = arith.constant 0 : i32
    return %c0_i32, %c0_i32_0 : i32, i32
  }
  func.func @transform_1(%arg0: i32) -> (i32, i32) {
    %c0_i32 = arith.constant 0 : i32
    %c0_i32_0 = arith.constant 0 : i32
    %c0_i32_1 = arith.constant 0 : i32
    return %c0_i32, %c0_i32_0 : i32, i32
  }
  func.func @transform_2(%arg0: i32) -> (i32, i32) {
    %c0_i32 = arith.constant 0 : i32
    %c0_i32_0 = arith.constant 0 : i32
    %c0_i32_1 = arith.constant 0 : i32
    return %c0_i32, %c0_i32_0 : i32, i32
  }
  func.func @transform_3(%arg0: i32) -> (i32, i32) {
    %c0_i32 = arith.constant 0 : i32
    %c0_i32_0 = arith.constant 0 : i32
    %c0_i32_1 = arith.constant 0 : i32
    return %c0_i32, %c0_i32_0 : i32, i32
  }
  func.func @transform_4(%arg0: i32) -> (i32, i32) {
    %c0_i32 = arith.constant 0 : i32
    %c0_i32_0 = arith.constant 0 : i32
    return %arg0, %c0_i32 : i32, i32
  }
  func.func @transform_5(%arg0: i32) -> (i32, i32) {
    %c0_i32 = arith.constant 0 : i32
    %c0_i32_0 = arith.constant 0 : i32
    return %arg0, %c0_i32 : i32, i32
  }
}

</mosaic_0001>

<bundles_post_ra>
// kernel: tpu_custom_call.1
= control target key start
LH: loop header
LB: loop body
LE: loop exit
PB: predicated region body
PF: predicated region fallthrough
CT: control target
= control target key end

     0   :  { %10 = vsyncpa [#allocation3], 0  ;;  %s507_s0 = inlined_call_operand.hbm [shape: bf16[32,256], index: 0, kind: input, shape index: {}]   ;;  %s508_s1 = inlined_call_operand.vmem [shape: f32[1,256], index: 1, kind: input, shape index: {}]   ;;  %s509_s2 = inlined_call_operand.vmem [shape: f32[1,256], index: 2, kind: input, shape index: {}]   ;;  %s510_s3 = inlined_call_operand.vmem [shape: f32[1,256], index: 3, kind: input, shape index: {}]   ;;  %s511_s4 = inlined_call_operand.hbm [shape: f32[16,32], index: 4, kind: input, shape index: {}]   ;;  %s512_s5 = inlined_call_operand.hbm [shape: f32[16,256], index: 5, kind: output, shape index: {}]  }
   0x1   :  { %11 = vsyncpa [#allocation6], 0 }
   0x2   :  { %12 = vsyncpa [#allocation4], 0  ;;  %s421_s18 = smov [#allocation2]   ;;  %s349_s22 = scalar_lea.hbm %s507_s0, 512 }
   0x3   :  { %s18_s19 = sshll.u32 %s421_s18, 4  ;;  %p350_p0 = scmp.ne.s32.totalorder %s507_s0, %s349_s22  ;;  %s19_s19 = int_to_ptr.vmem [resolvable:$true] %s18_s19 }
   0x4   :  { %p353_p1 = scmp.lt.u32.totalorder %s349_s22, %s507_s0 }
   0x6   :  { %p355_p2 = pnand %p353_p1, %p350_p0 }
   0x8   :  { %358 = shalt.err (!%p355_p2)
}
   0x9   :  { %s359_s27 = scalar_lea.vmem %s19_s19, 512  ;;  %p364_p4 = scmp.lt.s32.totalorder %s19_s19, %s19_s19 }
   0xa   :  { %p360_p3 = scmp.ne.s32.totalorder %s19_s19, %s359_s27  ;;  %p365_p5 = scmp.lt.s32.totalorder %s359_s27, %s359_s27 }
   0xc   :  { %p366_p6 = por %p365_p5, %p364_p4 }
   0xe   :  { %p367_p7 = pnand %p366_p6, %p360_p3 }
  0x10   :  { %370 = shalt.err (!%p367_p7)
}
  0x11   :  { %s422_s28 = smov 128   ;;  %s423_s29 = smov 8  }
  0x12   :  { %24 = dma.hbm_to_vmem [thread:$0]  %s507_s0, 512, %s19_s19, [#allocation3], %s422_s28, %s422_s28, %s423_s29  }
  0x13   :  { %s424_s7 = smov [#allocation5]   ;;  %s371_s11 = scalar_lea.hbm %s511_s4, 256 }
  0x14   :  { %s36_s8 = sshll.u32 %s424_s7, 4  ;;  %p372_p8 = scmp.ne.s32.totalorder %s511_s4, %s371_s11  ;;  %s37_s8 = int_to_ptr.vmem [resolvable:$true] %s36_s8 }
  0x15   :  { %p375_p9 = scmp.lt.u32.totalorder %s371_s11, %s511_s4 }
  0x17   :  { %p377_p10 = pnand %p375_p9, %p372_p8 }
  0x19   :  { %380 = shalt.err (!%p377_p10)
}
  0x1a   :  { %s381_s16 = scalar_lea.vmem %s37_s8, 256  ;;  %p386_p12 = scmp.lt.s32.totalorder %s37_s8, %s37_s8 }
  0x1b   :  { %p382_p11 = scmp.ne.s32.totalorder %s37_s8, %s381_s16  ;;  %p387_p13 = scmp.lt.s32.totalorder %s381_s16, %s381_s16 }
  0x1d   :  { %p388_p0 = por %p387_p13, %p386_p12 }
  0x1f   :  { %p389_p1 = pnand %p388_p0, %p382_p11 }
  0x21   :  { %392 = shalt.err (!%p389_p1)
}
  0x22   :  { %42 = dma.hbm_to_vmem [thread:$0]  %s511_s4, 256, %s37_s8, [#allocation6], %s422_s28, %s422_s28, %s423_s29  }
  0x23   :  { %415 = dma.done.wait [#allocation3], 512  }
  0x24   :  { %416 = vsyncadd [#allocation3], 4294966784 }
  0x25   :  { %417 = dma.done.wait [#allocation6], 256  }
  0x26   :  { %418 = vsyncadd [#allocation6], 4294967040  ;;  %v425_v0 = vmov 0   ;;  %v335_v1 = vld [vmem:[#allocation2 + $0x4] ss:$8 sps:$4 sm:$0xff]   ;;  %vm87_vm0 = vcmask 261120   ;;  %v232_v18 = vlaneseq }
  0x27   :  { %169 = vmatprep.mubr.bf16.mxu0 %v425_v0  ;;  %123 = vmatprep.mubr.bf16.mxu1 %v425_v0  ;;  %v337_v2 = vld [vmem:[#allocation2] ss:$8 sps:$4 sm:$0xff]   ;;  %v338_v3 = vld [vmem:[#allocation2 + $0x14] ss:$8 sps:$4 sm:$0xff]   ;;  %v340_v5 = vld [vmem:[#allocation2 + $0x10] ss:$8 sps:$4 sm:$0xff]  }
  0x28   :  { %137 = vmatprep.subr.bf16.mxu0 %v335_v1  ;;  %v50_v4 = vld [vmem:[#allocation5] sm:$0xff]  ;;  %91 = vmatprep.subr.bf16.mxu1 %v335_v1  ;;  %v51_v6 = vld [vmem:[#allocation5 + $0x8] sm:$0xff]  ;;  %v233_v21 = vshrl.u32 %v232_v18, 7  ;;  %s426_s21 = smov [#allocation7]  }
  0x29   :  { %138 = vmatpush1.bf16.msra.mxu0 %v337_v2  ;;  %92 = vmatpush1.bf16.msra.mxu1 %v337_v2  ;;  %v52_v7 = vpack.c.bf16 %v51_v6, %v50_v4  ;;  %v230_v25 = vld [vmem:[%s508_s1] sm:$0x3]  ;;  %s299_s22 = sshll.u32 %s426_s21, 4  ;;  %s300_s22 = int_to_ptr.vmem [resolvable:$true] %s299_s22 }
  0x2a   :  { %139 = vmatprep.subr.bf16.mxu0 %v338_v3  ;;  %93 = vmatprep.subr.bf16.mxu1 %v338_v3  ;;  %v234_v24 = vsub.s32 0, %v233_v21  ;;  %v238_v26 = vsub.s32 1, %v233_v21  ;;  %v247_v29 = vld [vmem:[%s509_s2] sm:$0x3]  ;;  %s393_s23 = scalar_lea.vmem %s300_s22, 512  ;;  %p398_p3 = scmp.lt.s32.totalorder %s300_s22, %s300_s22 }
  0x2b   :  { %v53_v8 = vunpack.c.l.bf16 %v52_v7  ;;  %v54_v9 = vunpack.c.h.bf16 %v52_v7  ;;  %v246_v56 = vld [vmem:[%s510_s3] sm:$0x3]  ;;  %p394_p2 = scmp.ne.s32.totalorder %s300_s22, %s393_s23  ;;  %p399_p4 = scmp.lt.s32.totalorder %s393_s23, %s393_s23 }
  0x2c   :  { %v235_v27 = vrot.slane %v230_v25, %v234_v24  ;;  %v239_v30 = vrot.slane %v230_v25, %v238_v26  ;;  %v256_v36 = vrot.slane %v247_v29, %v234_v24  ;;  %v260_v40 = vrot.slane %v247_v29, %v238_v26 }
  0x2d   :  { %140 = vmatpush1.bf16.msra.mxu0 %v340_v5  ;;  %94 = vmatpush1.bf16.msra.mxu1 %v340_v5  ;;  %v55_v10 = vsub.f32 %v50_v4, %v53_v8  ;;  %v56_v11 = vsub.f32 %v51_v6, %v54_v9  ;;  %v279_v57 = vrot.slane %v246_v56, %v234_v24  ;;  %p400_p5 = por %p399_p4, %p398_p3 }
  0x2e   :  { %183 = vmatprep.subr.bf16.mxu0 %v335_v1  ;;  %v283_v58 = vrot.slane %v246_v56, %v238_v26 }
  0x2f   :  { %v57_v12 = vpack.c.bf16 %v56_v11, %v55_v10  ;;  %p401_p6 = pnand %p400_p5, %p394_p2 }
  0x30   :  { %317 = vmatmul.mubr.msk.bf16.vlgmr.msra.gmra.mrb[0].mxu0 %vm87_vm0, %v52_v7 }
  0x31   :  { %184 = vmatpush1.bf16.msra.mxu0 %v337_v2  ;;  %215 = vmatprep.mubr.bf16.mxu0 %v425_v0  ;;  %v58_v13 = vunpack.c.l.bf16 %v57_v12  ;;  %v59_v14 = vunpack.c.h.bf16 %v57_v12 }
  0x32   :  { %185 = vmatprep.subr.bf16.mxu0 %v338_v3  ;;  %316 = vmatmul.mubr.msk.bf16.vlgmr.msra.gmra.mrb[0].mxu1 %vm87_vm0, %v57_v12 }
  0x33   :  { %v60_v15 = vsub.f32 %v55_v10, %v58_v13  ;;  %v61_v16 = vsub.f32 %v56_v11, %v59_v14 }
  0x35   :  { %186 = vmatpush1.bf16.msra.mxu0 %v340_v5  ;;  %v62_v17 = vpack.c.bf16 %v61_v16, %v60_v15 }
  0x3c   :  { %318 = vmatmul.mubr.msk.bf16.vlgmr.msra.gmra.mrb[0].mxu0 %vm87_vm0, %v62_v17 }
 0x105   :  { %v125_v19 = vpop.f32.mrb[0].mxu1 }
 0x106   :  { %v127_v20 = vpop.f32.mrb[1].mxu1 }
 0x107   :  { %v129_v22 = vpop.f32.mrb[2].mxu1 }
 0x108   :  { %v131_v23 = vpop.f32.mrb[3].mxu1 }
 0x10f   :  { %v217_v28 = vpop.f32.mrb[0].mxu0 }
 0x110   :  { %v319_v31 = vadd.f32 %v217_v28, %v125_v19  ;;  %v219_v32 = vpop.f32.mrb[1].mxu0 }
 0x111   :  { %v320_v33 = vadd.f32 %v219_v32, %v127_v20  ;;  %v221_v34 = vpop.f32.mrb[2].mxu0 }
 0x112   :  { %v242_v35 = vsub.f32 %v319_v31, %v235_v27  ;;  %v321_v37 = vadd.f32 %v221_v34, %v129_v22  ;;  %v223_v38 = vpop.f32.mrb[3].mxu0 }
 0x113   :  { %v243_v39 = vsub.f32 %v320_v33, %v239_v30  ;;  %v322_v41 = vadd.f32 %v223_v38, %v131_v23 }
 0x114   :  { %v248_v42 = vmul.f32 %v242_v35, %v242_v35  ;;  %v244_v43 = vsub.f32 %v321_v37, %v235_v27 }
 0x115   :  { %v249_v44 = vmul.f32 %v243_v39, %v243_v39  ;;  %v245_v45 = vsub.f32 %v322_v41, %v239_v30 }
 0x116   :  { %v263_v46 = vmul.f32 %v256_v36, %v248_v42  ;;  %v250_v47 = vmul.f32 %v244_v43, %v244_v43 }
 0x117   :  { %v264_v48 = vmul.f32 %v260_v40, %v249_v44  ;;  %v251_v49 = vmul.f32 %v245_v45, %v245_v45 }
 0x118   :  { %v267_v50 = vmul.f32 1.442695, %v263_v46  ;;  %v265_v51 = vmul.f32 %v256_v36, %v250_v47 }
 0x119   :  { %v269_v52 = vmul.f32 1.442695, %v264_v48  ;;  %v266_v53 = vmul.f32 %v260_v40, %v251_v49 }
 0x11a   :  { %341 = vpow2.f32 %v267_v50  ;;  %v271_v54 = vmul.f32 1.442695, %v265_v51 }
 0x11b   :  { %343 = vpow2.f32 %v269_v52  ;;  %v273_v55 = vmul.f32 1.442695, %v266_v53 }
 0x11c   :  { %345 = vpow2.f32 %v271_v54 }
 0x11d   :  { %347 = vpow2.f32 %v273_v55 }
 0x124   :  { %v342_v59 = vpop.eup %341 }
 0x125   :  { %v344_v60 = vpop.eup %343  ;;  %v286_v61 = vmul.f32 %v342_v59, %v279_v57 }
 0x126   :  { %v346_v62 = vpop.eup %345  ;;  %v287_v63 = vmul.f32 %v344_v60, %v283_v58 }
 0x127   :  { %v348_v0 = vpop.eup %347  ;;  %290 = vst [vmem:[#allocation7] sm:$0xff] %v286_v61  ;;  %v288_v1 = vmul.f32 %v346_v62, %v279_v57 }
 0x128   :  { %291 = vst [vmem:[#allocation7 + $0x8] sm:$0xff] %v287_v63  ;;  %v289_v2 = vmul.f32 %v348_v0, %v283_v58 }
 0x129   :  { %292 = vst [vmem:[#allocation7 + $0x10] sm:$0xff] %v288_v1 }
 0x12a   :  { %293 = vst [vmem:[#allocation7 + $0x18] sm:$0xff] %v289_v2 }
 0x12b   :  { %404 = shalt.err (!%p401_p6)
}
 0x12c   :  { %s405_s25 = scalar_lea.hbm %s512_s5, 512 }
 0x12d   :  { %p406_p7 = scmp.ne.s32.totalorder %s512_s5, %s405_s25  ;;  %p409_p8 = scmp.lt.u32.totalorder %s405_s25, %s512_s5 }
 0x12f   :  { %p411_p9 = pnand %p409_p8, %p406_p7 }
 0x131   :  { %414 = shalt.err (!%p411_p9)
}
 0x132   :  { %s427_s30 = smov 256   ;;  %s428_s6 = smov 16  }
 0x133   :  { %305 = dma.vmem_to_hbm [thread:$0]  %s300_s22, 512, %s512_s5, [#allocation4], %s427_s30, %s427_s30, %s428_s6  }
 0x134   :  { %419 = dma.done.wait [#allocation4], 512  }
 0x135   :  { %420 = vsyncadd [#allocation4], 4294966784 }
 0x136   :  { %309 = vsyncpa [#allocation3], 1 }
 0x137   :  { %310 = vsyncpa [#allocation6], 1 }
 0x138   :  { %311 = vsyncpa [#allocation4], 1 }

</bundles_post_ra>
